<compile_context>
chip_gen: v5e
topology: v5e:2x2
jax: 0.10.0
libtpu: 0.0.40
codegen_flags: <defaults>
</compile_context>

<pallas_src>
import jax
import jax.numpy as jnp
import numpy as np
from jax.experimental import pallas as pl
from jax.experimental.pallas import tpu as pltpu


def _same_pad(kernel_size):
    # Mirrors SamePadConv1D.padding_shape
    if (kernel_size - 1) % 2 != 0:
        p = (kernel_size - 1) // 2
        return p, p + 1
    p = (kernel_size - 1) // 2
    return p, p


def _pad_seq(x, pad_l, pad_r):
    """Zero-pad along the sequence axis (axis=1). x: (N, L, C)."""
    N, _, C = x.shape
    parts = []
    if pad_l:
        parts.append(jnp.zeros((N, pad_l, C), x.dtype))
    parts.append(x)
    if pad_r:
        parts.append(jnp.zeros((N, pad_r, C), x.dtype))
    return jnp.concatenate(parts, axis=1) if len(parts) > 1 else x


def _conv_relu(xp, w_ref, b_ref, ksize, out_len):
    """relu(conv1d(xp) + b) over an already-padded sequence.

    xp: (N, Lp, Cin) bf16 value; w_ref: (K, Cin, Cout) bf16 ref;
    b_ref: (1, 1, Cout) f32 ref.  Returns (N, out_len, Cout) f32.

    Bias is folded into the final ReLU (no broadcast-initialized accumulator),
    and the tap results are accumulated in 2D so only one reshape happens per
    conv.  The per-tap sublane-offset slice of xp remains — the shifted-output
    / pltpu.roll variants trade a D-wide slice for a 192-wide f32 one and are
    not a clear win; kept as the proven-to-lower form.
    """
    N, _, Cin = xp.shape
    Cout = w_ref.shape[2]
    acc = None
    for k in range(ksize):  # static unrolled taps -> K bf16 matmuls on the MXU
        xs = xp[:, k:k + out_len, :].reshape(N * out_len, Cin)
        y = jnp.dot(xs, w_ref[k], preferred_element_type=jnp.float32)
        acc = y if acc is None else acc + y
    acc = acc.reshape(N, out_len, Cout)
    return jnp.maximum(acc + b_ref[...], 0.0)


def _branch_features(x, wf_ref, bf_ref, w2_ref, b2_ref):
    """x: (N, L, D) bf16 -> pooled features (N, Cm3+Cm4+Cs2) f32."""
    N, L, _ = x.shape
    split = wf_ref.shape[2] - w2_ref.shape[1]     # Cm3 + Cm4 (stack1 channels after)

    # One shared pad covering "same" padding of k=2 (0,1), k=3 (1,1), k=4 (1,2).
    xp = _pad_seq(x, 1, 2)                                  # (N, L+3, D)
    h = _conv_relu(xp, wf_ref, bf_ref, 4, L)                # (N, L, 192) f32

    pooled = jnp.max(h, axis=1)                             # (N, 192)
    m34 = pooled[:, :split]                                 # (N, 128) = [m3|m4]

    # Stack branch second conv: k=3, same padding (1, 1), relu, global max pool.
    s1 = h[:, :, split:].astype(x.dtype)                    # (N, L, 64) bf16
    s1p = _pad_seq(s1, 1, 1)                                # (N, L+2, 64)
    h2 = _conv_relu(s1p, w2_ref, b2_ref, 3, L)              # (N, L, 64) f32
    stack_out = jnp.max(h2, axis=1)                         # (N, 64)

    # cat([multi3, multi4, stack], channel) — m3|m4 already contiguous.
    return jnp.concatenate([m34, stack_out], axis=1)        # (N, 192)


def _stack_multi_cnn_kernel(x_ref, wf_ref, bf_ref, w2_ref, b2_ref, sim_ref):
    # x_ref: (2*tb, L, D) — rows [0,tb) are question, rows [tb,2tb) the paired
    # answers.  One conv pass over the fused q|a batch, then split for cosine.
    feats = _branch_features(x_ref[...], wf_ref, bf_ref, w2_ref, b2_ref)
    tb = sim_ref.shape[0]
    fq = feats[:tb]
    fa = feats[tb:]

    # CosineSimilarity(dim=1), eps=1e-8 (dot / max(||q||*||a||, eps) — the
    # older F.cosine_similarity clamp; only differs for near-zero vectors).
    eps = 1e-8
    dot = jnp.sum(fq * fa, axis=1, keepdims=True)
    nq = jnp.sqrt(jnp.sum(fq * fq, axis=1, keepdims=True))
    na = jnp.sqrt(jnp.sum(fa * fa, axis=1, keepdims=True))
    sim_ref[...] = dot / jnp.maximum(nq * na, eps)          # (tb, 1)


def _pick_batch_tile(B, L, D, vmem_budget=14 * 1024 * 1024, max_tile=256):
    """Batch tile tb (q/a pairs per grid step) and padded batch size.

    Each step holds 2*tb sequences (q|a fused).  Per-sequence VMEM working set
    is roughly L*(8*D + 1800) bytes (double-buffered bf16 input + padded copy +
    f32 conv1/conv2 activations + slack).  The budget is conservative for
    v7x's 64 MiB physical VMEM; vmem_limit_bytes is raised to 32 MiB below.
    """
    per_seq = L * (8 * D + 1800) + 4096
    tb = min(max_tile, max(8, vmem_budget // (2 * per_seq)))
    if B >= 16:
        # Guarantee >= 2 grid steps so "parallel" can shard across v7x's 2 TCs.
        tb = min(tb, max(8, ((B + 1) // 2) // 8 * 8))
    if tb >= B:
        return B, B                      # small batch: one full-batch grid step
    nt = (B + tb - 1) // tb              # balance tiles, minimize batch padding
    tb = ((B + nt - 1) // nt + 7) // 8 * 8   # multiple of 8 -> legal (tb,1) out block
    return tb, nt * tb


def prepare_params(params):
    """One-time repack (hoisted out of the jitted forward): fuse the three
    first-layer convs into a single K=4 conv aligned to shared pad (1, 2).

    Fused taps act on xp where xp[j] = x[j-1] (zeros at j = 0, L+1, L+2):
      multi3 (k=3, pad(1,1)): taps 0..2 = wm3, tap 3 = 0
      multi4 (k=4, pad(1,2)): taps 0..3 = wm4
      stack1 (k=2, pad(0,1)): tap 1 = ws1[0], tap 2 = ws1[1], taps 0,3 = 0
    """
    ws1, wm3, wm4 = params["ws1"], params["wm3"], params["wm4"]
    D = wm3.shape[1]
    oc3, oc4, ocs = wm3.shape[2], wm4.shape[2], ws1.shape[2]
    wf = jnp.zeros((4, D, oc3 + oc4 + ocs), wm3.dtype)
    wf = wf.at[0:3, :, :oc3].set(wm3)
    wf = wf.at[0:4, :, oc3:oc3 + oc4].set(wm4)
    wf = wf.at[1:3, :, oc3 + oc4:].set(ws1)
    bf = jnp.concatenate([params["bm3"], params["bm4"], params["bs1"]], axis=-1)
    return {"embed": params["embed"], "wf": wf, "bf": bf,
            "ws2": params["ws2"], "bs2": params["bs2"]}


@jax.jit
def stack_multi_cnn_forward(question_ids, answer_ids, prepared):
    # question_length / answer_length are unused by the PyTorch forward, so
    # they are not passed to the kernel either.
    # TODO(synk): embedding gather kept in plain JAX glue; an in-kernel gather
    # (scalar-prefetched ids + per-row DMA) is the next lever if HBM-bound.
    embed = prepared["embed"]
    B, L = question_ids.shape
    D = embed.shape[1]

    tb, b_pad = _pick_batch_tile(B, L, D)
    nt = b_pad // tb
    pad = b_pad - B

    # Interleave question/answer rows per tile so every grid step reads one
    # contiguous (2*tb, L, D) block: [q_tile_i | a_tile_i].
    q_ids = jnp.pad(question_ids, ((0, pad), (0, 0)))
    a_ids = jnp.pad(answer_ids, ((0, pad), (0, 0)))
    ids = jnp.stack([q_ids.reshape(nt, tb, L), a_ids.reshape(nt, tb, L)],
                    axis=1).reshape(nt * 2 * tb, L)
    emb = jnp.take(embed, ids, axis=0)                      # (nt*2*tb, L, D) bf16

    wf, bf = prepared["wf"], prepared["bf"]
    ws2, bs2 = prepared["ws2"], prepared["bs2"]

    sim = pl.pallas_call(
        _stack_multi_cnn_kernel,
        out_shape=jax.ShapeDtypeStruct((b_pad, 1), jnp.float32),
        grid_spec=pltpu.PrefetchScalarGridSpec(
            num_scalar_prefetch=0,
            grid=(nt,),
            in_specs=[
                pl.BlockSpec((2 * tb, L, D), lambda i: (i, 0, 0)),  # q|a embeddings
                pl.BlockSpec(wf.shape, lambda i: (0, 0, 0)),        # fused conv1 W (resident)
                pl.BlockSpec(bf.shape, lambda i: (0, 0, 0)),        # fused conv1 b
                pl.BlockSpec(ws2.shape, lambda i: (0, 0, 0)),       # stack conv2 W
                pl.BlockSpec(bs2.shape, lambda i: (0, 0, 0)),       # stack conv2 b
            ],
            out_specs=pl.BlockSpec((tb, 1), lambda i: (i, 0)),
        ),
        compiler_params=pltpu.CompilerParams(
            dimension_semantics=("parallel",),
            vmem_limit_bytes=32 * 1024 * 1024,
        ),
    )(emb, wf, bf, ws2, bs2)
    # TODO(synk): for very long sequences, additionally tile L with a
    # running-max accumulator (halo of 1 for the stack branch) to bound VMEM.
    return sim[:B, 0]                                       # (B,)


def init_params(key, vocab_size, embed_dim,
                stack_ks=(2, 3), stack_oc=(64, 64),
                multi_ks=(3, 4), multi_oc=(64, 64)):
    keys = jax.random.split(key, 9)
    p = {"embed": jax.random.normal(keys[0], (vocab_size, embed_dim),
                                    jnp.float32).astype(jnp.bfloat16)}

    def conv_init(kw, kb, K, cin, cout):
        bound = 1.0 / np.sqrt(cin * K)
        w = jax.random.uniform(kw, (K, cin, cout), jnp.float32, -bound, bound)
        b = jax.random.uniform(kb, (1, 1, cout), jnp.float32, -bound, bound)
        return w.astype(jnp.bfloat16), b  # weights bf16, biases f32

    p["ws1"], p["bs1"] = conv_init(keys[1], keys[2], stack_ks[0], embed_dim, stack_oc[0])
    p["ws2"], p["bs2"] = conv_init(keys[3], keys[4], stack_ks[1], stack_oc[0], stack_oc[1])
    p["wm3"], p["bm3"] = conv_init(keys[5], keys[6], multi_ks[0], embed_dim, multi_oc[0])
    p["wm4"], p["bm4"] = conv_init(keys[7], keys[8], multi_ks[1], embed_dim, multi_oc[1])
    return p


def ref_forward(question_ids, answer_ids, params):
    """Pure-JAX reference of the PyTorch module, using the same bf16 parameters
    (and the kernel's bf16 cast of the stack intermediate) so the check is tight."""
    f32 = jnp.float32
    sent = jnp.concatenate([question_ids, answer_ids], axis=0)
    x = jnp.take(params["embed"], sent, axis=0).astype(f32)
    bs = question_ids.shape[0]

    def conv_same(x, w, b, K):
        pl_, pr_ = _same_pad(K)
        xp = jnp.pad(x, ((0, 0), (pl_, pr_), (0, 0)))
        L = x.shape[1]
        out = jnp.zeros((x.shape[0], L, w.shape[2]), f32) + b.astype(f32)
        for k in range(K):
            out = out + jnp.einsum("nlc,co->nlo", xp[:, k:k + L, :], w[k].astype(f32))
        return out

    h = jax.nn.relu(conv_same(x, params["ws1"], params["bs1"], 2))
    h = h.astype(jnp.bfloat16).astype(f32)   # mirror kernel's bf16 MXU input
    h = jax.nn.relu(conv_same(h, params["ws2"], params["bs2"], 3))
    stack_out = jnp.max(h, axis=1)
    m3 = jnp.max(jax.nn.relu(conv_same(x, params["wm3"], params["bm3"], 3)), axis=1)
    m4 = jnp.max(jax.nn.relu(conv_same(x, params["wm4"], params["bm4"], 4)), axis=1)
    cnn = jnp.concatenate([m3, m4, stack_out], axis=1)
    q, a = cnn[:bs], cnn[bs:]
    num = jnp.sum(q * a, axis=1)
    den = jnp.maximum(jnp.linalg.norm(q, axis=1) * jnp.linalg.norm(a, axis=1), 1e-8)
    return num / den


if __name__ == "__main__":
    B, L, VOCAB, D = 2, 8, 32, 16

    key = jax.random.PRNGKey(0)
    kp, kq, ka = jax.random.split(key, 3)
    params = init_params(kp, VOCAB, D)
    prepared = prepare_params(params)   # one-time fused-weight repack

    question_ids = jax.random.randint(kq, (B, L), 0, VOCAB, dtype=jnp.int32)
    answer_ids = jax.random.randint(ka, (B, L), 0, VOCAB, dtype=jnp.int32)
    question_len = jnp.full((B,), L, jnp.int32)  # present in the PyTorch API, unused
    answer_len = jnp.full((B,), L, jnp.int32)

    sim = stack_multi_cnn_forward(question_ids, answer_ids, prepared)
    sim = jax.block_until_ready(sim)

    ref = ref_forward(question_ids, answer_ids, params)
    np.testing.assert_allclose(np.asarray(sim), np.asarray(ref), rtol=1e-3, atol=1e-3)
    print("KERNEL_OK")
</pallas_src>

<mosaic_0001>
module attributes {stable_mosaic.version = 11 : i64} {
  func.func @_stack_multi_cnn_kernel(%arg0: i32, %arg1: memref<4x8x16xbf16, #tpu.memory_space<vmem>>, %arg2: memref<4x16x192xbf16, #tpu.memory_space<vmem>>, %arg3: memref<1x1x192xf32, #tpu.memory_space<vmem>>, %arg4: memref<3x64x64xbf16, #tpu.memory_space<vmem>>, %arg5: memref<1x1x64xf32, #tpu.memory_space<vmem>>, %arg6: memref<2x1xf32, #tpu.memory_space<vmem>>) attributes {dimension_semantics = [#tpu.dimension_semantics<parallel>], iteration_bounds = array<i64: 1>, scalar_prefetch = 0 : i64, scratch_operands = 0 : i64, tpu.core_type = #tpu.core_type<tc>, window_params = [{transform_indices = @transform_0, window_bounds = array<i64: 4, 8, 16>}, {pipeline_mode = #tpu.pipeline_mode<synchronous>, transform_indices = @transform_1, window_bounds = array<i64: 4, 16, 192>}, {pipeline_mode = #tpu.pipeline_mode<synchronous>, transform_indices = @transform_2, window_bounds = array<i64: 1, 1, 192>}, {pipeline_mode = #tpu.pipeline_mode<synchronous>, transform_indices = @transform_3, window_bounds = array<i64: 3, 64, 64>}, {pipeline_mode = #tpu.pipeline_mode<synchronous>, transform_indices = @transform_4, window_bounds = array<i64: 1, 1, 64>}, {transform_indices = @transform_5, window_bounds = array<i64: 2, 1>}]} {
    %c0 = arith.constant 0 : index
    %c0_0 = arith.constant 0 : index
    %c0_1 = arith.constant 0 : index
    %0 = vector.load %arg1[%c0, %c0_0, %c0_1] : memref<4x8x16xbf16, #tpu.memory_space<vmem>>, vector<4x8x16xbf16>
    %cst = arith.constant 0.000000e+00 : bf16
    %1 = vector.broadcast %cst : bf16 to vector<4x1x16xbf16>
    %cst_2 = arith.constant 0.000000e+00 : bf16
    %2 = vector.broadcast %cst_2 : bf16 to vector<4x2x16xbf16>
    %3 = tpu.concatenate %1, %0, %2 in 1 : vector<4x1x16xbf16>, vector<4x8x16xbf16>, vector<4x2x16xbf16> -> vector<4x11x16xbf16>
    %4 = vector.extract_strided_slice %3 {offsets = [0, 0, 0], sizes = [4, 8, 16], strides = [1, 1, 1]} : vector<4x11x16xbf16> to vector<4x8x16xbf16>
    %5 = vector.shape_cast %4 : vector<4x8x16xbf16> to vector<32x16xbf16>
    %c0_3 = arith.constant 0 : index
    %c0_4 = arith.constant 0 : index
    %c0_5 = arith.constant 0 : index
    %6 = vector.load %arg2[%c0_3, %c0_4, %c0_5] : memref<4x16x192xbf16, #tpu.memory_space<vmem>>, vector<1x16x192xbf16>
    %7 = vector.shape_cast %6 : vector<1x16x192xbf16> to vector<16x192xbf16>
    %cst_6 = arith.constant dense<0.000000e+00> : vector<32x192xf32>
    %8 = tpu.matmul %5, %7, %cst_6 {dimension_numbers = #tpu.dot_dimension_numbers<[1], [0], [0], [1], [0, 0, 1, 1], [], []>} : vector<32x16xbf16>, vector<16x192xbf16>, vector<32x192xf32> -> vector<32x192xf32>
    %9 = vector.extract_strided_slice %3 {offsets = [0, 1, 0], sizes = [4, 8, 16], strides = [1, 1, 1]} : vector<4x11x16xbf16> to vector<4x8x16xbf16>
    %10 = vector.shape_cast %9 : vector<4x8x16xbf16> to vector<32x16xbf16>
    %c1 = arith.constant 1 : index
    %c0_7 = arith.constant 0 : index
    %c0_8 = arith.constant 0 : index
    %11 = vector.load %arg2[%c1, %c0_7, %c0_8] : memref<4x16x192xbf16, #tpu.memory_space<vmem>>, vector<1x16x192xbf16>
    %12 = vector.shape_cast %11 : vector<1x16x192xbf16> to vector<16x192xbf16>
    %cst_9 = arith.constant dense<0.000000e+00> : vector<32x192xf32>
    %13 = tpu.matmul %10, %12, %cst_9 {dimension_numbers = #tpu.dot_dimension_numbers<[1], [0], [0], [1], [0, 0, 1, 1], [], []>} : vector<32x16xbf16>, vector<16x192xbf16>, vector<32x192xf32> -> vector<32x192xf32>
    %14 = arith.addf %8, %13 : vector<32x192xf32>
    %15 = vector.extract_strided_slice %3 {offsets = [0, 2, 0], sizes = [4, 8, 16], strides = [1, 1, 1]} : vector<4x11x16xbf16> to vector<4x8x16xbf16>
    %16 = vector.shape_cast %15 : vector<4x8x16xbf16> to vector<32x16xbf16>
    %c2 = arith.constant 2 : index
    %c0_10 = arith.constant 0 : index
    %c0_11 = arith.constant 0 : index
    %17 = vector.load %arg2[%c2, %c0_10, %c0_11] : memref<4x16x192xbf16, #tpu.memory_space<vmem>>, vector<1x16x192xbf16>
    %18 = vector.shape_cast %17 : vector<1x16x192xbf16> to vector<16x192xbf16>
    %cst_12 = arith.constant dense<0.000000e+00> : vector<32x192xf32>
    %19 = tpu.matmul %16, %18, %cst_12 {dimension_numbers = #tpu.dot_dimension_numbers<[1], [0], [0], [1], [0, 0, 1, 1], [], []>} : vector<32x16xbf16>, vector<16x192xbf16>, vector<32x192xf32> -> vector<32x192xf32>
    %20 = arith.addf %14, %19 : vector<32x192xf32>
    %21 = vector.extract_strided_slice %3 {offsets = [0, 3, 0], sizes = [4, 8, 16], strides = [1, 1, 1]} : vector<4x11x16xbf16> to vector<4x8x16xbf16>
    %22 = vector.shape_cast %21 : vector<4x8x16xbf16> to vector<32x16xbf16>
    %c3 = arith.constant 3 : index
    %c0_13 = arith.constant 0 : index
    %c0_14 = arith.constant 0 : index
    %23 = vector.load %arg2[%c3, %c0_13, %c0_14] : memref<4x16x192xbf16, #tpu.memory_space<vmem>>, vector<1x16x192xbf16>
    %24 = vector.shape_cast %23 : vector<1x16x192xbf16> to vector<16x192xbf16>
    %cst_15 = arith.constant dense<0.000000e+00> : vector<32x192xf32>
    %25 = tpu.matmul %22, %24, %cst_15 {dimension_numbers = #tpu.dot_dimension_numbers<[1], [0], [0], [1], [0, 0, 1, 1], [], []>} : vector<32x16xbf16>, vector<16x192xbf16>, vector<32x192xf32> -> vector<32x192xf32>
    %26 = arith.addf %20, %25 : vector<32x192xf32>
    %27 = vector.shape_cast %26 : vector<32x192xf32> to vector<4x8x192xf32>
    %c0_16 = arith.constant 0 : index
    %c0_17 = arith.constant 0 : index
    %c0_18 = arith.constant 0 : index
    %28 = vector.load %arg3[%c0_16, %c0_17, %c0_18] : memref<1x1x192xf32, #tpu.memory_space<vmem>>, vector<1x1x192xf32>
    %29 = vector.broadcast %28 : vector<1x1x192xf32> to vector<4x8x192xf32>
    %30 = arith.addf %27, %29 : vector<4x8x192xf32>
    %cst_19 = arith.constant 0.000000e+00 : f32
    %31 = vector.broadcast %cst_19 : f32 to vector<4x8x192xf32>
    %32 = arith.maximumf %30, %31 : vector<4x8x192xf32>
    %cst_20 = arith.constant dense<0xFF800000> : vector<4x192xf32>
    %33 = vector.multi_reduction <maximumf>, %32, %cst_20 [1] : vector<4x8x192xf32> to vector<4x192xf32>
    %34 = vector.extract_strided_slice %33 {offsets = [0, 0], sizes = [4, 128], strides = [1, 1]} : vector<4x192xf32> to vector<4x128xf32>
    %35 = vector.extract_strided_slice %32 {offsets = [0, 0, 128], sizes = [4, 8, 64], strides = [1, 1, 1]} : vector<4x8x192xf32> to vector<4x8x64xf32>
    %36 = arith.truncf %35 : vector<4x8x64xf32> to vector<4x8x64xbf16>
    %cst_21 = arith.constant 0.000000e+00 : bf16
    %37 = vector.broadcast %cst_21 : bf16 to vector<4x1x64xbf16>
    %cst_22 = arith.constant 0.000000e+00 : bf16
    %38 = vector.broadcast %cst_22 : bf16 to vector<4x1x64xbf16>
    %39 = tpu.concatenate %37, %36, %38 in 1 : vector<4x1x64xbf16>, vector<4x8x64xbf16>, vector<4x1x64xbf16> -> vector<4x10x64xbf16>
    %40 = vector.extract_strided_slice %39 {offsets = [0, 0, 0], sizes = [4, 8, 64], strides = [1, 1, 1]} : vector<4x10x64xbf16> to vector<4x8x64xbf16>
    %41 = vector.shape_cast %40 : vector<4x8x64xbf16> to vector<32x64xbf16>
    %c0_23 = arith.constant 0 : index
    %c0_24 = arith.constant 0 : index
    %c0_25 = arith.constant 0 : index
    %42 = vector.load %arg4[%c0_23, %c0_24, %c0_25] : memref<3x64x64xbf16, #tpu.memory_space<vmem>>, vector<1x64x64xbf16>
    %43 = vector.shape_cast %42 : vector<1x64x64xbf16> to vector<64x64xbf16>
    %cst_26 = arith.constant dense<0.000000e+00> : vector<32x64xf32>
    %44 = tpu.matmul %41, %43, %cst_26 {dimension_numbers = #tpu.dot_dimension_numbers<[1], [0], [0], [1], [0, 0, 1, 1], [], []>} : vector<32x64xbf16>, vector<64x64xbf16>, vector<32x64xf32> -> vector<32x64xf32>
    %45 = vector.extract_strided_slice %39 {offsets = [0, 1, 0], sizes = [4, 8, 64], strides = [1, 1, 1]} : vector<4x10x64xbf16> to vector<4x8x64xbf16>
    %46 = vector.shape_cast %45 : vector<4x8x64xbf16> to vector<32x64xbf16>
    %c1_27 = arith.constant 1 : index
    %c0_28 = arith.constant 0 : index
    %c0_29 = arith.constant 0 : index
    %47 = vector.load %arg4[%c1_27, %c0_28, %c0_29] : memref<3x64x64xbf16, #tpu.memory_space<vmem>>, vector<1x64x64xbf16>
    %48 = vector.shape_cast %47 : vector<1x64x64xbf16> to vector<64x64xbf16>
    %cst_30 = arith.constant dense<0.000000e+00> : vector<32x64xf32>
    %49 = tpu.matmul %46, %48, %cst_30 {dimension_numbers = #tpu.dot_dimension_numbers<[1], [0], [0], [1], [0, 0, 1, 1], [], []>} : vector<32x64xbf16>, vector<64x64xbf16>, vector<32x64xf32> -> vector<32x64xf32>
    %50 = arith.addf %44, %49 : vector<32x64xf32>
    %51 = vector.extract_strided_slice %39 {offsets = [0, 2, 0], sizes = [4, 8, 64], strides = [1, 1, 1]} : vector<4x10x64xbf16> to vector<4x8x64xbf16>
    %52 = vector.shape_cast %51 : vector<4x8x64xbf16> to vector<32x64xbf16>
    %c2_31 = arith.constant 2 : index
    %c0_32 = arith.constant 0 : index
    %c0_33 = arith.constant 0 : index
    %53 = vector.load %arg4[%c2_31, %c0_32, %c0_33] : memref<3x64x64xbf16, #tpu.memory_space<vmem>>, vector<1x64x64xbf16>
    %54 = vector.shape_cast %53 : vector<1x64x64xbf16> to vector<64x64xbf16>
    %cst_34 = arith.constant dense<0.000000e+00> : vector<32x64xf32>
    %55 = tpu.matmul %52, %54, %cst_34 {dimension_numbers = #tpu.dot_dimension_numbers<[1], [0], [0], [1], [0, 0, 1, 1], [], []>} : vector<32x64xbf16>, vector<64x64xbf16>, vector<32x64xf32> -> vector<32x64xf32>
    %56 = arith.addf %50, %55 : vector<32x64xf32>
    %57 = vector.shape_cast %56 : vector<32x64xf32> to vector<4x8x64xf32>
    %c0_35 = arith.constant 0 : index
    %c0_36 = arith.constant 0 : index
    %c0_37 = arith.constant 0 : index
    %58 = vector.load %arg5[%c0_35, %c0_36, %c0_37] : memref<1x1x64xf32, #tpu.memory_space<vmem>>, vector<1x1x64xf32>
    %59 = vector.broadcast %58 : vector<1x1x64xf32> to vector<4x8x64xf32>
    %60 = arith.addf %57, %59 : vector<4x8x64xf32>
    %cst_38 = arith.constant 0.000000e+00 : f32
    %61 = vector.broadcast %cst_38 : f32 to vector<4x8x64xf32>
    %62 = arith.maximumf %60, %61 : vector<4x8x64xf32>
    %cst_39 = arith.constant dense<0xFF800000> : vector<4x64xf32>
    %63 = vector.multi_reduction <maximumf>, %62, %cst_39 [1] : vector<4x8x64xf32> to vector<4x64xf32>
    %64 = tpu.concatenate %34, %63 in 1 : vector<4x128xf32>, vector<4x64xf32> -> vector<4x192xf32>
    %65 = vector.extract_strided_slice %64 {offsets = [0, 0], sizes = [2, 192], strides = [1, 1]} : vector<4x192xf32> to vector<2x192xf32>
    %66 = vector.extract_strided_slice %64 {offsets = [2, 0], sizes = [2, 192], strides = [1, 1]} : vector<4x192xf32> to vector<2x192xf32>
    %67 = arith.mulf %65, %66 : vector<2x192xf32>
    %cst_40 = arith.constant dense<0.000000e+00> : vector<2xf32>
    %68 = vector.multi_reduction <add>, %67, %cst_40 [1] : vector<2x192xf32> to vector<2xf32>
    %69 = vector.shape_cast %68 : vector<2xf32> to vector<2x1xf32>
    %70 = arith.mulf %65, %65 : vector<2x192xf32>
    %cst_41 = arith.constant dense<0.000000e+00> : vector<2xf32>
    %71 = vector.multi_reduction <add>, %70, %cst_41 [1] : vector<2x192xf32> to vector<2xf32>
    %72 = vector.shape_cast %71 : vector<2xf32> to vector<2x1xf32>
    %73 = math.sqrt %72 : vector<2x1xf32>
    %74 = arith.mulf %66, %66 : vector<2x192xf32>
    %cst_42 = arith.constant dense<0.000000e+00> : vector<2xf32>
    %75 = vector.multi_reduction <add>, %74, %cst_42 [1] : vector<2x192xf32> to vector<2xf32>
    %76 = vector.shape_cast %75 : vector<2xf32> to vector<2x1xf32>
    %77 = math.sqrt %76 : vector<2x1xf32>
    %78 = arith.mulf %73, %77 : vector<2x1xf32>
    %cst_43 = arith.constant 9.99999993E-9 : f32
    %79 = vector.broadcast %cst_43 : f32 to vector<2x1xf32>
    %80 = arith.maximumf %78, %79 : vector<2x1xf32>
    %81 = arith.divf %69, %80 : vector<2x1xf32>
    %c0_44 = arith.constant 0 : index
    %c0_45 = arith.constant 0 : index
    %82 = vector.load %arg6[%c0_44, %c0_45] : memref<2x1xf32, #tpu.memory_space<vmem>>, vector<2x1xf32>
    tpu.vector_store %arg6[%c0_44, %c0_45], %81 {strides = array<i32>} : memref<2x1xf32, #tpu.memory_space<vmem>>, vector<2x1xf32>,
    return
  }
  func.func @transform_0(%arg0: i32) -> (i32, i32, i32) {
    %c0_i32 = arith.constant 0 : i32
    %c0_i32_0 = arith.constant 0 : i32
    %c0_i32_1 = arith.constant 0 : i32
    return %arg0, %c0_i32, %c0_i32_0 : i32, i32, i32
  }
  func.func @transform_1(%arg0: i32) -> (i32, i32, i32) {
    %c0_i32 = arith.constant 0 : i32
    %c0_i32_0 = arith.constant 0 : i32
    %c0_i32_1 = arith.constant 0 : i32
    %c0_i32_2 = arith.constant 0 : i32
    return %c0_i32, %c0_i32_0, %c0_i32_1 : i32, i32, i32
  }
  func.func @transform_2(%arg0: i32) -> (i32, i32, i32) {
    %c0_i32 = arith.constant 0 : i32
    %c0_i32_0 = arith.constant 0 : i32
    %c0_i32_1 = arith.constant 0 : i32
    %c0_i32_2 = arith.constant 0 : i32
    return %c0_i32, %c0_i32_0, %c0_i32_1 : i32, i32, i32
  }
  func.func @transform_3(%arg0: i32) -> (i32, i32, i32) {
    %c0_i32 = arith.constant 0 : i32
    %c0_i32_0 = arith.constant 0 : i32
    %c0_i32_1 = arith.constant 0 : i32
    %c0_i32_2 = arith.constant 0 : i32
    return %c0_i32, %c0_i32_0, %c0_i32_1 : i32, i32, i32
  }
  func.func @transform_4(%arg0: i32) -> (i32, i32, i32) {
    %c0_i32 = arith.constant 0 : i32
    %c0_i32_0 = arith.constant 0 : i32
    %c0_i32_1 = arith.constant 0 : i32
    %c0_i32_2 = arith.constant 0 : i32
    return %c0_i32, %c0_i32_0, %c0_i32_1 : i32, i32, i32
  }
  func.func @transform_5(%arg0: i32) -> (i32, i32) {
    %c0_i32 = arith.constant 0 : i32
    %c0_i32_0 = arith.constant 0 : i32
    return %arg0, %c0_i32 : i32, i32
  }
}

</mosaic_0001>

<bundles_post_ra>
// kernel: stack_multi_cnn_forward.1
= control target key start
LH: loop header
LB: loop body
LE: loop exit
PB: predicated region body
PF: predicated region fallthrough
CT: control target
= control target key end

     0   :  { %vm69_vm0 = vcmask 1040384   ;;  %vm70_vm1 = vsmask.f32 256  ;;  %vm76_vm2 = vcmask 1044480   ;;  %vm77_vm3 = vsmask.f32 4352  ;;  %s1561_s1 = inlined_call_operand.vmem [shape: bf16[4,16,192], index: 1, kind: input, shape index: {}]   ;;  %s1562_s0 = inlined_call_operand.vmem [shape: bf16[4,8,16], index: 0, kind: input, shape index: {}]   ;;  %s1563_s2 = inlined_call_operand.vmem [shape: f32[1,1,192], index: 2, kind: input, shape index: {}]   ;;  %s1564_s3 = inlined_call_operand.vmem [shape: bf16[3,64,64], index: 3, kind: input, shape index: {}]   ;;  %s1565_s4 = inlined_call_operand.vmem [shape: f32[1,1,64], index: 4, kind: input, shape index: {}]   ;;  %s1566_s5 = inlined_call_operand.vmem [shape: f32[2,1], index: 5, kind: output, shape index: {}]  }
   0x1   :  { %v1026_v0 = vld [vmem:[%s1561_s1] sm:$0xf]  ;;  %v1143_v1 = vld [vmem:[%s1561_s1 + $0x4] sm:$0xf0]  ;;  %v1014_v7 = vld [vmem:[%s1561_s1 + $0x10] sm:$0xf] }
   0x2   :  { %v1163_v2 = vld [vmem:[%s1562_s0] sm:$0xff]   ;;  %v1027_v3 = vor.u32 %v1143_v1, %v1026_v0  ;;  %v1170_v6 = vld [vmem:[%s1562_s0 + $0x8] sm:$0xff]   ;;  %v1145_v10 = vld [vmem:[%s1561_s1 + $0x14] sm:$0xf0]  ;;  %vm183_vm6 = vcmask 130048   ;;  %vm284_vm10 = vcmask 1042432  }
   0x3   :  { %v1164_v4 = vunpack.c.l.b16 %v1163_v2  ;;  %v1165_v5 = vunpack.c.h.b16 %v1163_v2  ;;  %v1168_v8 = vunpack.c.l.b16 %v1170_v6  ;;  %v1169_v9 = vunpack.c.h.b16 %v1170_v6  ;;  %v1144_v11 = vld [vmem:[%s1561_s1 + $0x14] sm:$0xf]  ;;  %v1016_v15 = vld [vmem:[%s1561_s1 + $0x18] sm:$0xf0]  ;;  %vm1235_vm4 = vmand %vm69_vm0, %vm70_vm1 }
   0x4   :  { %253 = vmatpush.bf16.msra.mxu2 %v1027_v3  ;;  %v1015_v14 = vor.u32 %v1145_v10, %v1014_v7  ;;  %v1019_v18 = vor.u32 %v1144_v11, %v1016_v15  ;;  %vm1241_vm5 = vmand %vm76_vm2, %vm77_vm3  ;;  %v1142_v35 = vld [vmem:[%s1561_s1 + $0x4] sm:$0xf]  ;;  %v1028_v36 = vld [vmem:[%s1561_s1 + $0x8] sm:$0xf0]  ;;  %vm105_vm7 = vsmask.f32 3328 }
   0x5   :  { %v33_v12 = vpack.c.b16 %v1164_v4, %v1164_v4  ;;  %v34_v13 = vpack.c.b16 %v1165_v5, %v1165_v5  ;;  %v35_v16 = vpack.c.b16 %v1168_v8, %v1168_v8  ;;  %v36_v17 = vpack.c.b16 %v1169_v9, %v1169_v9  ;;  %v1044_v37 = vld [vmem:[%s1561_s1 + $0x20] sm:$0xf]  ;;  %v1147_v41 = vld [vmem:[%s1561_s1 + $0x24] sm:$0xf0] }
   0x6   :  { %197 = vmatpush.bf16.msra.mxu0 %v1015_v14  ;;  %1171 = vmatpush.bf16.msra.mxu3 %v1015_v14  ;;  %v1031_v40 = vor.u32 %v1142_v35, %v1028_v36  ;;  %v1045_v44 = vor.u32 %v1147_v41, %v1044_v37  ;;  %vm106_vm8 = vsmask.f32 7440  ;;  %v1058_v41 = vld [vmem:[%s1561_s1 + $0x30] sm:$0xf]  ;;  %vm285_vm11 = vcmask 1046532  }
   0x7   :  { %v38_v19 = vshrl.u32 %v33_v12, 16  ;;  %v41_v20 = vshll.u32 %v33_v12, 16  ;;  %v45_v21 = vshrl.u32 %v34_v13, 16  ;;  %v48_v22 = vshll.u32 %v34_v13, 16  ;;  %216 = vmatpush.bf16.msra.mxu1 %v1019_v18  ;;  %vm1305_vm9 = vmor %vm105_vm7, %vm106_vm8 }
   0x8   :  { %v52_v23 = vshrl.u32 %v35_v16, 16  ;;  %v55_v24 = vshll.u32 %v35_v16, 16  ;;  %v59_v25 = vshrl.u32 %v36_v17, 16  ;;  %v62_v26 = vshll.u32 %v36_v17, 16  ;;  %vm1361_vm14 = vmor %vm284_vm10, %vm285_vm11 }
   0x9   :  { %v40_v27 = vrot.slane %v38_v19, 7  ;;  %v47_v28 = vrot.slane %v45_v21, 7  ;;  %vm374_vm12 = vsmask.f32 2304  ;;  %vm375_vm13 = vsmask.f32 6416 }
   0xa   :  { %v54_v30 = vrot.slane %v52_v23, 7  ;;  %v61_v31 = vrot.slane %v59_v25, 7  ;;  %272 = vmatpush.bf16.msrb.mxu3 %v1031_v40  ;;  %335 = vmatpush.bf16.msrb.mxu0 %v1045_v44  ;;  %vm1377_vm15 = vmor %vm374_vm12, %vm375_vm13  ;;  %vm918_vm0 = vcmask 1041409   ;;  %vm920_vm1 = vcmask 1042434  }
   0xb   :  { %v43_v33 = vor.u32 %v41_v20, %v40_v27  ;;  %v50_v34 = vor.u32 %v48_v22, %v47_v28  ;;  %vm922_vm2 = vcmask 1043459   ;;  %vm713_vm3 = vcmask 523264  }
   0xc   :  { %v57_v38 = vor.u32 %v55_v24, %v54_v30  ;;  %v64_v39 = vor.u32 %v62_v26, %v61_v31  ;;  %vm941_vm7 = vcmask 517120  }
   0xd   :  { %v72_v42 = vsel %vm1235_vm4, 0, %v43_v33  ;;  %v73_v43 = vsel %vm1235_vm4, 0, %v50_v34 }
   0xe   :  { %v79_v45 = vsel %vm1241_vm5, %v72_v42, 0  ;;  %v80_v46 = vsel %vm1241_vm5, %v73_v43, 0  ;;  %v74_v47 = vsel %vm1235_vm4, 0, %v57_v38  ;;  %v75_v51 = vsel %vm1235_vm4, 0, %v64_v39  ;;  %v1149_v42 = vld [vmem:[%s1561_s1 + $0x34] sm:$0xf0] }
   0xf   :  { %v89_v48 = vunpack.c.l.b16 %v79_v45  ;;  %v90_v49 = vunpack.c.h.b16 %v79_v45  ;;  %v91_v50 = vunpack.c.l.b16 %v80_v46  ;;  %v92_v52 = vunpack.c.h.b16 %v80_v46 }
  0x10   :  { %v81_v55 = vsel %vm1241_vm5, %v74_v47, 0  ;;  %v82_v58 = vsel %vm1241_vm5, %v75_v51, 0 }
  0x11   :  { %v1269_v53 = vpack.c.b16 %v89_v48, %v89_v48  ;;  %v1271_v54 = vpack.c.b16 %v91_v50, %v91_v50  ;;  %v1275_v56 = vpack.c.b16 %v90_v49, %v90_v49  ;;  %v1277_v57 = vpack.c.b16 %v91_v50, %v89_v48 }
  0x12   :  { %v1285_v63 = vpack.c.b16 %v92_v52, %v92_v52  ;;  %v93_v0 = vunpack.c.l.b16 %v81_v55  ;;  %v94_v1 = vunpack.c.h.b16 %v81_v55  ;;  %v95_v5 = vunpack.c.l.b16 %v82_v58 }
  0x13   :  { %v109_v59 = vshrl.u32 %v1269_v53, 16  ;;  %v112_v60 = vshll.u32 %v1269_v53, 16  ;;  %v123_v61 = vshrl.u32 %v1271_v54, 16  ;;  %v126_v62 = vshll.u32 %v1271_v54, 16  ;;  %1032 = vmatmul.msk.bf16.vlgmr.msra.gmra.mxu2 %vm183_vm6, %v1277_v57 }
  0x14   :  { %v1036_v2 = vrot.slane %v1269_v53, 9  ;;  %v289_v3 = vrot.slane %v1275_v56, 5  ;;  %v1037_v4 = vrot.slane %v1271_v54, 9  ;;  %v381_v10 = vshrl.u32 %v1275_v56, 16 }
  0x15   :  { %v1292_v6 = vrot.slane %v109_v59, 5  ;;  %v1294_v7 = vrot.slane %v112_v60, 6  ;;  %v111_v8 = vrot.slane %v109_v59, 4  ;;  %v114_v9 = vrot.slane %v112_v60, 5 }
  0x16   :  { %v118_v11 = vshll.u32 %v1275_v56, 16  ;;  %v125_v12 = vrot.slane %v123_v61, 4  ;;  %v128_v13 = vrot.slane %v126_v62, 5  ;;  %v1298_v14 = vrot.slane %v123_v61, 5 }
  0x17   :  { %v115_v15 = vor.u32 %v114_v9, %v111_v8  ;;  %v132_v16 = vshll.u32 %v1285_v63, 16  ;;  %v96_v17 = vunpack.c.h.b16 %v82_v58  ;;  %v1301_v18 = vrot.slane %v126_v62, 6 }
  0x18   :  { %v120_v20 = vrot.slane %v118_v11, 5  ;;  %v129_v21 = vor.u32 %v128_v13, %v125_v12  ;;  %v1309_v22 = vpack.c.b16 %v93_v0, %v93_v0  ;;  %v391_v23 = vshrl.u32 %v1285_v63, 16 }
  0x19   :  { %v116_v24 = vrot.slane %v115_v15, 4  ;;  %v134_v25 = vrot.slane %v132_v16, 5  ;;  %v1312_v26 = vpack.c.b16 %v94_v1, %v94_v1  ;;  %v1314_v28 = vpack.c.b16 %v95_v5, %v95_v5 }
  0x1a   :  { %v130_v27 = vrot.slane %v129_v21, 4  ;;  %v1316_v30 = vpack.c.b16 %v96_v17, %v96_v17  ;;  %v137_v31 = vshrl.u32 %v1309_v22, 16  ;;  %v383_v33 = vrot.slane %v381_v10, 5 }
  0x1b   :  { %v121_v34 = vsel %vm1305_vm9, %v116_v24, %v120_v20  ;;  %v140_v35 = vshll.u32 %v1309_v22, 16  ;;  %v146_v36 = vshll.u32 %v1312_v26, 16  ;;  %v151_v40 = vshrl.u32 %v1314_v28, 16 }
  0x1c   :  { %v135_v37 = vsel %vm1305_vm9, %v130_v27, %v134_v25  ;;  %v167_v38 = vunpack.c.l.b16 %v121_v34  ;;  %v139_v39 = vrot.slane %v137_v31, 4  ;;  %v384_v44 = vrot.slane %v118_v11, 6 }
  0x1d   :  { %v168_v43 = vunpack.c.l.b16 %v135_v37  ;;  %v142_v45 = vrot.slane %v140_v35, 5  ;;  %v154_v46 = vshll.u32 %v1314_v28, 16  ;;  %v148_v47 = vrot.slane %v146_v36, 5 }
  0x1e   :  { %v153_v48 = vrot.slane %v151_v40, 4  ;;  %v160_v49 = vshll.u32 %v1316_v30, 16  ;;  %v1340_v50 = vpack.c.b16 %v95_v5, %v93_v0  ;;  %v1059_v58 = vor.u32 %v1149_v42, %v1058_v41  ;;  %v1146_v0 = vld [vmem:[%s1561_s1 + $0x24] sm:$0xf]  ;;  %v1046_v5 = vld [vmem:[%s1561_s1 + $0x28] sm:$0xf0] }
  0x1f   :  { %v171_v51 = vpack.c.b16 %v168_v43, %v167_v38  ;;  %v143_v52 = vor.u32 %v142_v45, %v139_v39  ;;  %v156_v55 = vrot.slane %v154_v46, 5  ;;  %v393_v59 = vrot.slane %v391_v23, 5 }
  0x20   :  { %v394_v60 = vrot.slane %v132_v16, 6  ;;  %v162_v1 = vrot.slane %v160_v49, 5  ;;  %v293_v8 = vrot.slane %v1285_v63, 5  ;;  %449 = vmatpush.bf16.msrb.mxu2 %v1059_v58  ;;  %v379_v9 = vor.u32 %v1294_v7, %v1292_v6  ;;  %v1148_v6 = vld [vmem:[%s1561_s1 + $0x34] sm:$0xf] }
  0x21   :  { %1020 = vmatmul.msk.bf16.vlgmr.msra.gmra.mxu0 %vm183_vm6, %v171_v51  ;;  %v144_v61 = vrot.slane %v143_v52, 4  ;;  %v157_v62 = vor.u32 %v156_v55, %v153_v48  ;;  %1022 = vmatmul.msk.bf16.vlgmr.msra.gmra.mxu1 %vm183_vm6, %v171_v51  ;;  %v385_v63 = vor.u32 %v384_v44, %v383_v33  ;;  %v389_v13 = vor.u32 %v1301_v18, %v1298_v14  ;;  %v1060_v7 = vld [vmem:[%s1561_s1 + $0x38] sm:$0xf0] }
  0x22   :  { %v380_v16 = vrot.slane %v379_v9, 4  ;;  %v395_v17 = vor.u32 %v394_v60, %v393_v59  ;;  %v1049_v20 = vor.u32 %v1146_v0, %v1046_v5  ;;  %v290_v24 = vsel %vm1361_vm14, %v1036_v2, %v289_v3 }
  0x23   :  { %v149_v10 = vsel %vm1305_vm9, %v144_v61, %v148_v47  ;;  %v158_v11 = vrot.slane %v157_v62, 4  ;;  %1033 = vmatmul.msk.bf16.gmra.mxu2 %vm183_vm6, %v1340_v50  ;;  %v390_v14 = vrot.slane %v389_v13, 4  ;;  %v294_v25 = vsel %vm1361_vm14, %v1037_v4, %v293_v8 }
  0x24   :  { %v169_v15 = vunpack.c.l.b16 %v149_v10  ;;  %354 = vmatpush.bf16.msrb.mxu1 %v1049_v20  ;;  %v1063_v27 = vor.u32 %v1148_v6, %v1060_v7  ;;  %v386_v34 = vsel %vm1377_vm15, %v380_v16, %v385_v63  ;;  %v306_v56 = vunpack.c.l.b16 %v290_v24 }
  0x25   :  { %v163_v21 = vsel %vm1305_vm9, %v158_v11, %v162_v1  ;;  %v396_v37 = vsel %vm1377_vm15, %v390_v14, %v395_v17  ;;  %v307_v38 = vunpack.c.l.b16 %v294_v25  ;;  %v420_v53 = vunpack.c.l.b16 %v386_v34 }
  0x26   :  { %v170_v18 = vunpack.c.l.b16 %v163_v21  ;;  %v421_v2 = vunpack.c.l.b16 %v396_v37  ;;  %v397_v54 = vrot.slane %v137_v31, 5  ;;  %v398_v3 = vrot.slane %v140_v35, 6 }
  0x27   :  { %v401_v4 = vshrl.u32 %v1312_v26, 16  ;;  %v407_v39 = vrot.slane %v151_v40, 5  ;;  %v408_v41 = vrot.slane %v154_v46, 6  ;;  %v411_v42 = vshrl.u32 %v1316_v30, 16 }
  0x28   :  { %v172_v33 = vpack.c.b16 %v170_v18, %v169_v15  ;;  %v310_v43 = vpack.c.b16 %v307_v38, %v306_v56  ;;  %v424_v44 = vpack.c.b16 %v421_v2, %v420_v53  ;;  %v399_v45 = vor.u32 %v398_v3, %v397_v54 }
  0x29   :  { %v404_v47 = vrot.slane %v146_v36, 6  ;;  %v403_v48 = vrot.slane %v401_v4, 5  ;;  %v409_v51 = vor.u32 %v408_v41, %v407_v39  ;;  %v413_v52 = vrot.slane %v411_v42, 5 }
  0x2a   :  { %1021 = vmatmul.msk.bf16.vlgmr.msra.gmra.mxu3 %vm183_vm6, %v172_v33  ;;  %v414_v31 = vrot.slane %v160_v49, 6  ;;  %v1038_v35 = vrot.slane %v1309_v22, 9  ;;  %v297_v40 = vrot.slane %v1312_v26, 5  ;;  %v1039_v46 = vrot.slane %v1314_v28, 9 }
  0x2b   :  { %468 = vmatpush.bf16.msra.mxu3 %v1063_v27  ;;  %v301_v55 = vrot.slane %v1316_v30, 5  ;;  %v400_v36 = vrot.slane %v399_v45, 4  ;;  %v405_v58 = vor.u32 %v404_v47, %v403_v48  ;;  %v410_v59 = vrot.slane %v409_v51, 4 }
  0x2c   :  { %v415_v60 = vor.u32 %v414_v31, %v413_v52  ;;  %v298_v49 = vsel %vm1361_vm14, %v1038_v35, %v297_v40 }
  0x2d   :  { %v302_v61 = vsel %vm1361_vm14, %v1039_v46, %v301_v55  ;;  %v406_v22 = vsel %vm1377_vm15, %v400_v36, %v405_v58  ;;  %v308_v28 = vunpack.c.l.b16 %v298_v49 }
  0x2e   :  { %v416_v26 = vsel %vm1377_vm15, %v410_v59, %v415_v60  ;;  %v309_v30 = vunpack.c.l.b16 %v302_v61  ;;  %v422_v62 = vunpack.c.l.b16 %v406_v22 }
  0x2f   :  { %v423_v1 = vunpack.c.l.b16 %v416_v26  ;;  %v1153_v26 = vld [vmem:[%s1564_s3 + $0x18] sm:$0xff] }
  0x30   :  { %v311_v0 = vpack.c.b16 %v309_v30, %v308_v28  ;;  %775 = vmatpush.bf16.msra.mxu1 %v1153_v26 }
  0x31   :  { %1023 = vmatmul.msk.bf16.gmra.mxu1 %vm183_vm6, %v172_v33  ;;  %1050 = vmatmul.msk.bf16.vlgmr.msrb.gmra.mxu0 %vm183_vm6, %v310_v43  ;;  %v425_v5 = vpack.c.b16 %v423_v1, %v422_v62 }
  0x33   :  { %1064 = vmatmul.msk.bf16.vlgmr.msrb.gmra.mxu2 %vm183_vm6, %v424_v44 }
  0x3a   :  { %1034 = vmatmul.msk.bf16.vlgmr.msrb.gmra.mxu3 %vm183_vm6, %v1277_v57 }
  0x41   :  { %1051 = vmatmul.msk.bf16.gmra.mxu0 %vm183_vm6, %v311_v0  ;;  %1052 = vmatmul.msk.bf16.vlgmr.msrb.gmra.mxu1 %vm183_vm6, %v310_v43 }
  0x43   :  { %1065 = vmatmul.msk.bf16.gmra.mxu2 %vm183_vm6, %v425_v5 }
  0x4a   :  { %1035 = vmatmul.msk.bf16.gmra.mxu3 %vm183_vm6, %v1340_v50  ;;  %v1436_v50 = vld [vmem:[%s1563_s2] sm:$0x3] }
  0x4b   :  { %v490_v23 = vperm.slane %v1436_v50, 0 }
  0x51   :  { %1053 = vmatmul.msk.bf16.gmra.mxu1 %vm183_vm6, %v311_v0 }
  0x5a   :  { %1066 = vmatmul.msk.bf16.vlgmr.msra.gmra.mxu3 %vm183_vm6, %v424_v44 }
  0x6a   :  { %1067 = vmatmul.msk.bf16.gmra.mxu3 %vm183_vm6, %v425_v5  ;;  %vm939_vm6 = vcmask 1041408  }
  0x96   :  { %v255_v57 = vpop.f32.mrf.mxu2 }
  0x9e   :  { %v199_v8 = vpop.f32.mrf.mxu0  ;;  %v257_v10 = vpop.f32.mrf.mxu2 }
  0x9f   :  { %v256_v9 = vadd.f32 %v255_v57, %v199_v8  ;;  %v1431_v13 = vpop.f32.mrf.mxu1  ;;  %v1152_v8 = vld [vmem:[%s1564_s3 + $0x10] sm:$0xff] }
  0xa0   :  { %776 = vmatpush.bf16.msra.mxu1 %v1152_v8 }
  0xa6   :  { %v201_v11 = vpop.f32.mrf.mxu0  ;;  %v260_v63 = vpop.f32.mrf.mxu2 }
  0xa7   :  { %v1438_v21 = vpop.f32.mrf.mxu1  ;;  %v258_v24 = vadd.f32 %v257_v10, %v201_v11 }
  0xad   :  { %v204_v15 = vpop.f32.mrf.mxu3 }
  0xae   :  { %v261_v6 = vadd.f32 %v260_v63, %v204_v15  ;;  %v337_v7 = vpop.f32.mrf.mxu0  ;;  %v262_v16 = vpop.f32.mrf.mxu2  ;;  %v1161_v15 = vld [vmem:[%s1564_s3 + $0x58] sm:$0xff] }
  0xaf   :  { %v366_v17 = vadd.f32 %v337_v7, %v256_v9  ;;  %v1441_v53 = vpop.f32.mrf.mxu1  ;;  %855 = vmatpush.bf16.msra.mxu2 %v1161_v15 }
  0xb5   :  { %v206_v20 = vpop.f32.mrf.mxu3 }
  0xb6   :  { %v339_v14 = vpop.f32.mrf.mxu0  ;;  %v451_v18 = vpop.f32.mrf.mxu2  ;;  %v263_v55 = vadd.f32 %v262_v16, %v206_v20  ;;  %v1151_v16 = vld [vmem:[%s1564_s3 + $0x8] sm:$0xff] }
  0xb7   :  { %v480_v25 = vadd.f32 %v451_v18, %v366_v17  ;;  %v368_v33 = vadd.f32 %v339_v14, %v258_v24  ;;  %v1445_v52 = vpop.f32.mrf.mxu1  ;;  %777 = vmatpush.bf16.msra.mxu1 %v1151_v16  ;;  %v1160_v18 = vld [vmem:[%s1564_s3 + $0x50] sm:$0xff] }
  0xb8   :  { %856 = vmatpush.bf16.msra.mxu2 %v1160_v18 }
  0xb9   :  { %v494_v27 = vadd.f32 %v490_v23, %v480_v25  ;;  %v1157_v25 = vld [vmem:[%s1564_s3 + $0x38] sm:$0xff] }
  0xba   :  { %724 = vmatpush.bf16.msra.mxu0 %v1157_v25 }
  0xbb   :  { %v502_v34 = vmax.f32 %v494_v27, 0.0  ;;  %v1150_v27 = vld [vmem:[%s1564_s3] sm:$0xff] }
  0xbc   :  { %778 = vmatpush.bf16.msra.mxu1 %v1150_v27 }
  0xbd   :  { %v274_v37 = vpop.f32.mrf.mxu3  ;;  %v510_v56 = vrot.slane %v502_v34, 4 }
  0xbe   :  { %v453_v38 = vpop.f32.mrf.mxu2  ;;  %v342_v3 = vpop.f32.mrf.mxu0 }
  0xbf   :  { %v511_v2 = vmax.f32 %v502_v34, %v510_v56  ;;  %v482_v54 = vadd.f32 %v453_v38, %v368_v33  ;;  %v370_v44 = vadd.f32 %v342_v3, %v261_v6  ;;  %v356_v9 = vpop.f32.mrf.mxu1  ;;  %v1476_v56 = vperm.slane %v1436_v50, 1  ;;  %v1156_v50 = vld [vmem:[%s1564_s3 + $0x30] sm:$0xff] }
  0xc0   :  { %725 = vmatpush.bf16.msra.mxu0 %v1156_v50 }
  0xc1   :  { %v512_v4 = vrot.slane %v511_v2, 2  ;;  %v496_v39 = vadd.f32 %v490_v23, %v482_v54  ;;  %v1159_v54 = vld [vmem:[%s1564_s3 + $0x48] sm:$0xff] }
  0xc2   :  { %857 = vmatpush.bf16.msra.mxu2 %v1159_v54 }
  0xc3   :  { %v504_v41 = vmax.f32 %v496_v39, 0.0  ;;  %v513_v43 = vmax.f32 %v511_v2, %v512_v4 }
  0xc5   :  { %v1443_v42 = vpop.f32.mrf.mxu3  ;;  %v516_v45 = vrot.slane %v504_v41, 4  ;;  %v514_v31 = vrot.slane %v513_v43, 1 }
  0xc6   :  { %v456_v47 = vpop.f32.mrf.mxu2  ;;  %v344_v46 = vpop.f32.mrf.mxu0  ;;  %v277_v39 = vadd.f32 %v1443_v42, %v1438_v21 }
  0xc7   :  { %v517_v48 = vmax.f32 %v504_v41, %v516_v45  ;;  %v484_v51 = vadd.f32 %v456_v47, %v370_v44  ;;  %v515_v60 = vmax.f32 %v513_v43, %v514_v31  ;;  %v372_v61 = vadd.f32 %v344_v46, %v263_v55  ;;  %v1158_v43 = vld [vmem:[%s1564_s3 + $0x40] sm:$0xff] }
  0xc8   :  { %858 = vmatpush.bf16.msra.mxu2 %v1158_v43  ;;  %v1154_v46 = vld [vmem:[%s1564_s3 + $0x20] sm:$0xff] }
  0xc9   :  { %v518_v35 = vrot.slane %v517_v48, 2  ;;  %v498_v40 = vadd.f32 %v490_v23, %v484_v51 }
  0xcb   :  { %v519_v36 = vmax.f32 %v517_v48, %v518_v35  ;;  %v506_v58 = vmax.f32 %v498_v40, 0.0  ;;  %v1155_v48 = vld [vmem:[%s1564_s3 + $0x28] sm:$0xff] }
  0xcc   :  { %726 = vmatpush.bf16.msra.mxu0 %v1155_v48 }
  0xcd   :  { %v1447_v59 = vpop.f32.mrf.mxu3  ;;  %v520_v49 = vrot.slane %v519_v36, 1  ;;  %v522_v22 = vrot.slane %v506_v58, 4 }
  0xce   :  { %v458_v28 = vpop.f32.mrf.mxu2  ;;  %v280_v55 = vadd.f32 %v1447_v59, %v1441_v53 }
  0xcf   :  { %v521_v30 = vmax.f32 %v519_v36, %v520_v49  ;;  %v523_v62 = vmax.f32 %v506_v58, %v522_v22  ;;  %v486_v1 = vadd.f32 %v458_v28, %v372_v61 }
  0xd0   :  { %727 = vmatpush.bf16.msra.mxu0 %v1154_v46 }
  0xd1   :  { %v524_v0 = vrot.slane %v523_v62, 2  ;;  %v500_v5 = vadd.f32 %v490_v23, %v486_v1  ;;  %v919_v57 = vsel %vm918_vm0, %v521_v30, %v515_v60  ;;  %v275_v23 = vadd.f32 %v274_v37, %v1431_v13  ;;  %v358_v37 = vpop.f32.mrf.mxu1 }
  0xd2   :  { %v369_v45 = vadd.f32 %v358_v37, %v277_v39 }
  0xd3   :  { %v525_v10 = vmax.f32 %v523_v62, %v524_v0  ;;  %v508_v11 = vmax.f32 %v500_v5, 0.0  ;;  %v367_v33 = vadd.f32 %v356_v9, %v275_v23 }
  0xd5   :  { %v1456_v63 = vpop.f32.mrf.mxu3  ;;  %v526_v6 = vrot.slane %v525_v10, 1  ;;  %v528_v7 = vrot.slane %v508_v11, 4 }
  0xd7   :  { %v527_v17 = vmax.f32 %v525_v10, %v526_v6  ;;  %v529_v20 = vmax.f32 %v508_v11, %v528_v7  ;;  %v282_v10 = vadd.f32 %v1456_v63, %v1445_v52 }
  0xd9   :  { %v530_v14 = vrot.slane %v529_v20, 2  ;;  %v921_v24 = vsel %vm920_vm1, %v527_v17, %v919_v57  ;;  %v361_v21 = vpop.f32.mrf.mxu1 }
  0xda   :  { %v371_v60 = vadd.f32 %v361_v21, %v280_v55 }
  0xdb   :  { %v531_v34 = vmax.f32 %v529_v20, %v530_v14 }
  0xdd   :  { %v470_v13 = vpop.f32.mrf.mxu3  ;;  %v532_v38 = vrot.slane %v531_v34, 1 }
  0xde   :  { %v481_v2 = vadd.f32 %v470_v13, %v367_v33 }
  0xdf   :  { %v533_v3 = vmax.f32 %v531_v34, %v532_v38 }
  0xe0   :  { %v495_v4 = vadd.f32 %v1476_v56, %v481_v2 }
  0xe1   :  { %v1491_v44 = vsel %vm922_vm2, %v533_v3, %v921_v24  ;;  %v363_v8 = vpop.f32.mrf.mxu1 }
  0xe2   :  { %v503_v41 = vmax.f32 %v495_v4, 0.0  ;;  %v373_v7 = vadd.f32 %v363_v8, %v282_v10 }
  0xe4   :  { %v534_v47 = vpack.c.bf16 %v503_v41, %v503_v41 }
  0xe5   :  { %v472_v51 = vpop.f32.mrf.mxu3 }
  0xe6   :  { %v542_v31 = vunpack.c.l.b16 %v534_v47  ;;  %v483_v35 = vadd.f32 %v472_v51, %v369_v45 }
  0xe8   :  { %v546_v42 = vpack.c.b16 %v542_v31, %v542_v31  ;;  %v497_v40 = vadd.f32 %v1476_v56, %v483_v35 }
  0xea   :  { %v551_v36 = vshrl.u32 %v546_v42, 16  ;;  %v505_v58 = vmax.f32 %v497_v40, 0.0  ;;  %v554_v61 = vshll.u32 %v546_v42, 16 }
  0xec   :  { %v553_v49 = vrot.slane %v551_v36, 7  ;;  %v535_v22 = vpack.c.bf16 %v505_v58, %v505_v58 }
  0xed   :  { %v475_v26 = vpop.f32.mrf.mxu3 }
  0xee   :  { %v556_v28 = vor.u32 %v554_v61, %v553_v49  ;;  %v543_v30 = vunpack.c.l.b16 %v535_v22  ;;  %v485_v62 = vadd.f32 %v475_v26, %v371_v60 }
  0xf0   :  { %v582_v1 = vsel %vm1235_vm4, 0, %v556_v28  ;;  %v547_v0 = vpack.c.b16 %v543_v30, %v543_v30  ;;  %v499_v5 = vadd.f32 %v1476_v56, %v485_v62 }
  0xf1   :  { %v586_v53 = vsel %vm1241_vm5, %v582_v1, 0 }
  0xf2   :  { %v602_v59 = vunpack.c.l.b16 %v586_v53  ;;  %v603_v57 = vunpack.c.h.b16 %v586_v53  ;;  %v558_v9 = vshrl.u32 %v547_v0, 16  ;;  %v507_v11 = vmax.f32 %v499_v5, 0.0 }
  0xf3   :  { %v561_v16 = vshll.u32 %v547_v0, 16 }
  0xf4   :  { %v610_v15 = vpack.c.b16 %v602_v59, %v602_v59  ;;  %v560_v6 = vrot.slane %v558_v9, 7  ;;  %v536_v17 = vpack.c.bf16 %v507_v11, %v507_v11  ;;  %v611_v23 = vpack.c.b16 %v603_v57, %v603_v57 }
  0xf5   :  { %v477_v20 = vpop.f32.mrf.mxu3 }
  0xf6   :  { %v619_v14 = vshrl.u32 %v610_v15, 16  ;;  %v622_v18 = vshll.u32 %v610_v15, 16  ;;  %v563_v24 = vor.u32 %v561_v16, %v560_v6  ;;  %v544_v25 = vunpack.c.l.b16 %v536_v17 }
  0xf7   :  { %v487_v27 = vadd.f32 %v477_v20, %v373_v7  ;;  %v792_v63 = vrot.slane %v611_v23, 5  ;;  %v1112_v4 = vrot.slane %v610_v15, 9  ;;  %v628_v48 = vshll.u32 %v611_v23, 16 }
  0xf8   :  { %v621_v33 = vrot.slane %v619_v14, 4  ;;  %v624_v34 = vrot.slane %v622_v18, 5  ;;  %v583_v13 = vsel %vm1235_vm4, 0, %v563_v24  ;;  %v548_v37 = vpack.c.b16 %v544_v25, %v544_v25 }
  0xf9   :  { %v501_v52 = vadd.f32 %v1476_v56, %v487_v27  ;;  %v587_v38 = vsel %vm1241_vm5, %v583_v13, 0  ;;  %v793_v42 = vsel %vm1361_vm14, %v1112_v4, %v792_v63  ;;  %v630_v61 = vrot.slane %v628_v48, 5 }
  0xfa   :  { %v604_v2 = vunpack.c.l.b16 %v587_v38  ;;  %v605_v54 = vunpack.c.h.b16 %v587_v38  ;;  %v565_v3 = vshrl.u32 %v548_v37, 16  ;;  %v625_v39 = vor.u32 %v624_v34, %v621_v33 }
  0xfb   :  { %v509_v50 = vmax.f32 %v501_v52, 0.0  ;;  %v568_v51 = vshll.u32 %v548_v37, 16  ;;  %v815_v30 = vunpack.c.l.b16 %v793_v42 }
  0xfc   :  { %v612_v41 = vpack.c.b16 %v604_v2, %v604_v2  ;;  %v613_v43 = vpack.c.b16 %v605_v54, %v605_v54  ;;  %v567_v45 = vrot.slane %v565_v3, 7  ;;  %v739_v47 = vpack.c.b16 %v604_v2, %v602_v59 }
  0xfd   :  { %v537_v31 = vpack.c.bf16 %v509_v50, %v509_v50  ;;  %v626_v36 = vrot.slane %v625_v39, 4 }
  0xfe   :  { %v633_v35 = vshrl.u32 %v612_v41, 16  ;;  %v636_v56 = vshll.u32 %v612_v41, 16  ;;  %v796_v21 = vrot.slane %v613_v43, 5  ;;  %1110 = vmatmul.msk.bf16.vlgmr.msra.gmra.mxu1 %vm713_vm3, %v739_v47  ;;  %v570_v40 = vor.u32 %v568_v51, %v567_v45 }
  0xff   :  { %v545_v46 = vunpack.c.l.b16 %v537_v31  ;;  %v1113_v55 = vrot.slane %v612_v41, 9  ;;  %v642_v49 = vshll.u32 %v613_v43, 16  ;;  %v631_v53 = vsel %vm1305_vm9, %v626_v36, %v630_v61 }
 0x100   :  { %v635_v58 = vrot.slane %v633_v35, 4  ;;  %v638_v60 = vrot.slane %v636_v56, 5  ;;  %v584_v28 = vsel %vm1235_vm4, 0, %v570_v40  ;;  %v683_v16 = vunpack.c.l.b16 %v631_v53 }
 0x101   :  { %v549_v22 = vpack.c.b16 %v545_v46, %v545_v46  ;;  %v797_v26 = vsel %vm1361_vm14, %v1113_v55, %v796_v21  ;;  %v588_v0 = vsel %vm1241_vm5, %v584_v28, 0  ;;  %v644_v57 = vrot.slane %v642_v49, 5 }
 0x102   :  { %v816_v62 = vunpack.c.l.b16 %v797_v26  ;;  %v639_v1 = vor.u32 %v638_v60, %v635_v58  ;;  %v606_v59 = vunpack.c.l.b16 %v588_v0  ;;  %v607_v10 = vunpack.c.h.b16 %v588_v0 }
 0x103   :  { %v572_v5 = vshrl.u32 %v549_v22, 16  ;;  %v575_v15 = vshll.u32 %v549_v22, 16 }
 0x104   :  { %v819_v8 = vpack.c.b16 %v816_v62, %v815_v30  ;;  %v640_v9 = vrot.slane %v639_v1, 4  ;;  %v614_v6 = vpack.c.b16 %v606_v59, %v606_v59  ;;  %v615_v18 = vpack.c.b16 %v607_v10, %v607_v10  ;;  %v1172_v62 = vld [vmem:[%s1565_s4] ss:$0 sm:$0xff] }
 0x105   :  { %v574_v11 = vrot.slane %v572_v5, 7 }
 0x106   :  { %1140 = vmatmul.msk.bf16.vlgmr.msra.gmra.mxu2 %vm713_vm3, %v819_v8  ;;  %v645_v7 = vsel %vm1305_vm9, %v640_v9, %v644_v57  ;;  %v647_v23 = vshrl.u32 %v614_v6, 16  ;;  %v650_v14 = vshll.u32 %v614_v6, 16  ;;  %v800_v52 = vrot.slane %v615_v18, 5 }
 0x107   :  { %v577_v17 = vor.u32 %v575_v15, %v574_v11  ;;  %v684_v20 = vunpack.c.l.b16 %v645_v7  ;;  %v1114_v63 = vrot.slane %v614_v6, 9  ;;  %v656_v4 = vshll.u32 %v615_v18, 16 }
 0x108   :  { %v649_v27 = vrot.slane %v647_v23, 4  ;;  %v652_v33 = vrot.slane %v650_v14, 5 }
 0x109   :  { %v687_v24 = vpack.c.b16 %v684_v20, %v683_v16  ;;  %v585_v25 = vsel %vm1235_vm4, 0, %v577_v17  ;;  %v801_v32 = vsel %vm1361_vm14, %v1114_v63, %v800_v52  ;;  %v658_v56 = vrot.slane %v656_v4, 5 }
 0x10a   :  { %v589_v34 = vsel %vm1241_vm5, %v585_v25, 0  ;;  %v653_v3 = vor.u32 %v652_v33, %v649_v27  ;;  %v817_v31 = vunpack.c.l.b16 %v801_v32  ;;  %vm965_vm4 = vcmask 1043458  }
 0x10b   :  { %1092 = vmatmul.msk.bf16.vlgmr.msra.gmra.mxu0 %vm713_vm3, %v687_v24  ;;  %v608_v13 = vunpack.c.l.b16 %v589_v34  ;;  %v609_v37 = vunpack.c.h.b16 %v589_v34  ;;  %vm967_vm5 = vcmask 519170  }
 0x10c   :  { %v654_v48 = vrot.slane %v653_v3, 4 }
 0x10d   :  { %v616_v38 = vpack.c.b16 %v608_v13, %v608_v13  ;;  %v617_v2 = vpack.c.b16 %v609_v37, %v609_v37  ;;  %v740_v54 = vpack.c.b16 %v608_v13, %v606_v59 }
 0x10e   :  { %v659_v40 = vsel %vm1305_vm9, %v654_v48, %v658_v56 }
 0x10f   :  { %v661_v50 = vshrl.u32 %v616_v38, 16  ;;  %v664_v39 = vshll.u32 %v616_v38, 16  ;;  %1111 = vmatmul.msk.bf16.gmra.mxu1 %vm713_vm3, %v740_v54  ;;  %v804_v29 = vrot.slane %v617_v2, 5  ;;  %v1115_v41 = vrot.slane %v616_v38, 9 }
 0x110   :  { %v670_v47 = vshll.u32 %v617_v2, 16  ;;  %v685_v58 = vunpack.c.l.b16 %v659_v40  ;;  %v933_v40 = vrot.slane %v1491_v44, 2 }
 0x111   :  { %v663_v43 = vrot.slane %v661_v50, 4  ;;  %v666_v45 = vrot.slane %v664_v39, 5  ;;  %v805_v51 = vsel %vm1361_vm14, %v1115_v41, %v804_v29 }
 0x112   :  { %v818_v35 = vunpack.c.l.b16 %v805_v51  ;;  %v672_v55 = vrot.slane %v670_v47, 5 }
 0x113   :  { %v667_v21 = vor.u32 %v666_v45, %v663_v43 }
 0x114   :  { %v820_v42 = vpack.c.b16 %v818_v35, %v817_v31 }
 0x115   :  { %v668_v46 = vrot.slane %v667_v21, 4 }
 0x116   :  { %1141 = vmatmul.msk.bf16.gmra.mxu2 %vm713_vm3, %v820_v42 }
 0x117   :  { %v673_v36 = vsel %vm1305_vm9, %v668_v46, %v672_v55 }
 0x118   :  { %v686_v60 = vunpack.c.l.b16 %v673_v36 }
 0x11a   :  { %v688_v49 = vpack.c.b16 %v686_v60, %v685_v58  ;;  %v946_v58 = vmul.f32 %v1491_v44, %v1491_v44 }
 0x11c   :  { %1093 = vmatmul.msk.bf16.gmra.mxu0 %vm713_vm3, %v688_v49 }
 0x17b   :  { %v780_v12 = vpop.f32.mrf.mxu1 }
 0x183   :  { %v782_v28 = vpop.f32.mrf.mxu1 }
 0x188   :  { %v729_v61 = vpop.f32.mrf.mxu0 }
 0x189   :  { %v860_v22 = vpop.f32.mrf.mxu2  ;;  %v781_v26 = vadd.f32 %v780_v12, %v729_v61  ;;  %v937_v61 = vmul.f32 %v933_v40, %v1491_v44 }
 0x18b   :  { %v870_v30 = vadd.f32 %v860_v22, %v781_v26  ;;  %v966_v22 = vsel %vm965_vm4, %v946_v58, 0.0 }
 0x18c   :  { %v785_v57 = vpop.f32.mrf.mxu1 }
 0x18d   :  { %v878_v53 = vadd.f32 %v1172_v62, %v870_v30 }
 0x18f   :  { %v882_v9 = vmax.f32 %v878_v53, 0.0 }
 0x190   :  { %v731_v1 = vpop.f32.mrf.mxu0 }
 0x191   :  { %v783_v0 = vadd.f32 %v782_v28, %v731_v1  ;;  %v862_v5 = vpop.f32.mrf.mxu2  ;;  %v886_v7 = vsel %vm713_vm3, %v882_v9, -inf }
 0x192   :  { %v887_v23 = vrot.slane %v886_v7, 4 }
 0x193   :  { %v871_v19 = vadd.f32 %v862_v5, %v783_v0 }
 0x194   :  { %v787_v24 = vpop.f32.mrf.mxu1  ;;  %v888_v34 = vmax.f32 %v886_v7, %v887_v23 }
 0x195   :  { %v879_v59 = vadd.f32 %v1172_v62, %v871_v19  ;;  %v948_v19 = vsel %vm939_vm6, %v946_v58, 0.0 }
 0x196   :  { %v889_v54 = vrot.slane %v888_v34, 2 }
 0x197   :  { %v883_v8 = vmax.f32 %v879_v59, 0.0 }
 0x198   :  { %v890_v32 = vmax.f32 %v888_v34, %v889_v54 }
 0x199   :  { %v734_v10 = vpop.f32.mrf.mxu0  ;;  %v893_v11 = vsel %vm713_vm3, %v883_v8, -inf  ;;  %v865_v6 = vpop.f32.mrf.mxu2 }
 0x19a   :  { %v786_v15 = vadd.f32 %v785_v57, %v734_v10  ;;  %v894_v17 = vrot.slane %v893_v11, 4  ;;  %v891_v48 = vrot.slane %v890_v32, 1 }
 0x19c   :  { %v872_v16 = vadd.f32 %v865_v6, %v786_v15  ;;  %v895_v18 = vmax.f32 %v893_v11, %v894_v17  ;;  %v892_v21 = vmax.f32 %v890_v32, %v891_v48 }
 0x19e   :  { %v880_v20 = vadd.f32 %v1172_v62, %v872_v16  ;;  %v896_v63 = vrot.slane %v895_v18, 2 }
 0x1a0   :  { %v884_v14 = vmax.f32 %v880_v20, 0.0  ;;  %v897_v50 = vmax.f32 %v895_v18, %v896_v63 }
 0x1a1   :  { %v736_v25 = vpop.f32.mrf.mxu0  ;;  %v867_v37 = vpop.f32.mrf.mxu2 }
 0x1a2   :  { %v900_v27 = vsel %vm713_vm3, %v884_v14, -inf  ;;  %v788_v33 = vadd.f32 %v787_v24, %v736_v25  ;;  %v898_v43 = vrot.slane %v897_v50, 1 }
 0x1a3   :  { %v901_v13 = vrot.slane %v900_v27, 4 }
 0x1a4   :  { %v873_v52 = vadd.f32 %v867_v37, %v788_v33  ;;  %v899_v31 = vmax.f32 %v897_v50, %v898_v43 }
 0x1a5   :  { %v902_v38 = vmax.f32 %v900_v27, %v901_v13 }
 0x1a6   :  { %v881_v2 = vadd.f32 %v1172_v62, %v873_v52  ;;  %v929_v55 = vsel %vm918_vm0, %v899_v31, %v892_v21  ;;  %v940_v62 = vsel %vm939_vm6, %v937_v61, 0.0  ;;  %vm1004_vm0 = vcmask 1024  }
 0x1a7   :  { %v903_v3 = vrot.slane %v902_v38, 2 }
 0x1a8   :  { %v885_v4 = vmax.f32 %v881_v2, 0.0 }
 0x1a9   :  { %v904_v39 = vmax.f32 %v902_v38, %v903_v3 }
 0x1aa   :  { %v907_v29 = vsel %vm713_vm3, %v885_v4, -inf }
 0x1ab   :  { %v908_v41 = vrot.slane %v907_v29, 4  ;;  %v905_v47 = vrot.slane %v904_v39, 1 }
 0x1ad   :  { %v909_v45 = vmax.f32 %v907_v29, %v908_v41  ;;  %v906_v56 = vmax.f32 %v904_v39, %v905_v47 }
 0x1af   :  { %v910_v51 = vrot.slane %v909_v45, 2  ;;  %v930_v36 = vsel %vm920_vm1, %v906_v56, %v929_v55 }
 0x1b1   :  { %v911_v35 = vmax.f32 %v909_v45, %v910_v51 }
 0x1b3   :  { %v912_v42 = vrot.slane %v911_v35, 1 }
 0x1b5   :  { %v913_v46 = vmax.f32 %v911_v35, %v912_v42 }
 0x1b7   :  { %v931_v60 = vsel %vm922_vm2, %v913_v46, %v930_v36 }
 0x1b8   :  { %v947_v49 = vmul.f32 %v931_v60, %v931_v60  ;;  %v934_v12 = vrot.slane %v931_v60, 2 }
 0x1ba   :  { %v968_v26 = vsel %vm967_vm5, %v947_v49, 0.0  ;;  %v938_v28 = vmul.f32 %v934_v12, %v931_v60  ;;  %v949_v5 = vsel %vm941_vm7, %v947_v49, 0.0 }
 0x1bb   :  { %v969_v30 = vadd.f32 %v968_v26, %v966_v22  ;;  %v950_v53 = vadd.f32 %v949_v5, %v948_v19 }
 0x1bc   :  { %v942_v1 = vsel %vm941_vm7, %v938_v28, 0.0 }
 0x1bd   :  { %970 = vadd.xlane.f32.xlu0 %v969_v30  ;;  %v943_v0 = vadd.f32 %v942_v1, %v940_v62 }
 0x1bf   :  { %944 = vadd.xlane.f32.xlu1 %v943_v0 }
 0x1c5   :  { %951 = vadd.xlane.f32.xlu0 %v950_v53 }
 0x230   :  { %v971_v59 = vpop.xlane.xlu0 %970 }
 0x231   :  { %1173 = vrsqrt.f32 %v971_v59  ;;  %vm979_vm8 = vcmp.eq.f32.partialorder %v971_v59, inf  ;;  %v982_v18 = vand.u32 2147483648, %v971_v59  ;;  %vm981_vm9 = vcmp.eq.f32.partialorder %v971_v59, 0.0 }
 0x232   :  { %v945_v41 = vpop.xlane.xlu1 %944 }
 0x237   :  { %v1174_v57 = vpop.eup %1173 }
 0x238   :  { %v973_v8 = vmul.f32 %v1174_v57, %v971_v59  ;;  %v952_v44 = vpop.xlane.xlu0 %951 }
 0x239   :  { %1175 = vrsqrt.f32 %v952_v44  ;;  %vm960_vm10 = vcmp.eq.f32.partialorder %v952_v44, inf  ;;  %v963_v33 = vand.u32 2147483648, %v952_v44  ;;  %vm962_vm11 = vcmp.eq.f32.partialorder %v952_v44, 0.0 }
 0x23a   :  { %v974_v9 = vmul.f32 %v1174_v57, %v973_v8 }
 0x23c   :  { %v975_v10 = vmul.f32 0.5, %v974_v9 }
 0x23e   :  { %v976_v11 = vsub.f32 1.5, %v975_v10 }
 0x23f   :  { %v1176_v15 = vpop.eup %1175 }
 0x240   :  { %v977_v6 = vmul.f32 %v1174_v57, %v976_v11  ;;  %v954_v7 = vmul.f32 %v1176_v15, %v952_v44 }
 0x242   :  { %v978_v16 = vmul.f32 %v977_v6, %v971_v59  ;;  %v955_v17 = vmul.f32 %v1176_v15, %v954_v7 }
 0x244   :  { %v956_v20 = vmul.f32 0.5, %v955_v17  ;;  %v980_v23 = vsel %vm979_vm8, %v971_v59, %v978_v16 }
 0x245   :  { %v983_v25 = vsel %vm981_vm9, %v982_v18, %v980_v23 }
 0x246   :  { %v957_v14 = vsub.f32 1.5, %v956_v20  ;;  %v985_v34 = vrot.slane %v983_v25, 2 }
 0x248   :  { %v958_v24 = vmul.f32 %v1176_v15, %v957_v14 }
 0x24a   :  { %v959_v27 = vmul.f32 %v958_v24, %v952_v44 }
 0x24c   :  { %v961_v13 = vsel %vm960_vm10, %v952_v44, %v959_v27 }
 0x24d   :  { %v964_v37 = vsel %vm962_vm11, %v963_v33, %v961_v13 }
 0x24e   :  { %v987_v52 = vmul.f32 %v985_v34, %v964_v37 }
 0x250   :  { %v988_v63 = vmax.f32 %v987_v52, 1e-08 }
 0x252   :  { %1177 = vrcp.f32 %v988_v63  ;;  %v1000_v3 = vand.u32 2147483648, %v988_v63  ;;  %v998_v50 = vand.u32 2147483647, %v988_v63  ;;  %vm994_vm13 = vweird.f32 %v988_v63 }
 0x254   :  { %v1001_v29 = vor.u32 1.1754944e-38, %v1000_v3  ;;  %vm999_vm15 = vcmp.eq.f32.partialorder %v998_v50, 8.507059e+37 }
 0x258   :  { %v1178_v38 = vpop.eup %1177 }
 0x259   :  { %v990_v2 = vmul.f32 %v1178_v38, %v988_v63  ;;  %vm995_vm12 = vweird.f32 %v1178_v38 }
 0x25a   :  { %vm996_vm14 = vmor %vm994_vm13, %vm995_vm12 }
 0x25b   :  { %v991_v54 = vsub.f32 1.0, %v990_v2 }
 0x25d   :  { %v992_v4 = vmul.f32 %v1178_v38, %v991_v54 }
 0x25f   :  { %v993_v39 = vadd.f32 %v1178_v38, %v992_v4 }
 0x261   :  { %v997_v32 = vsel %vm996_vm14, %v1178_v38, %v993_v39 }
 0x262   :  { %v1002_v43 = vsel %vm999_vm15, %v1001_v29, %v997_v32 }
 0x263   :  { %v1003_v45 = vmul.f32 %v1002_v43, %v945_v41 }
 0x265   :  { %1005 = vst.msk [vmem:[%s1566_s5] sm:$0x3] %vm1004_vm0, %v1003_v45 }

</bundles_post_ra>
